<compile_context>
chip_gen: v5e
topology: v5e:2x2
jax: 0.10.0
libtpu: 0.0.40
codegen_flags: <defaults>
</compile_context>

<pallas_src>
import functools

import jax
import jax.numpy as jnp
from jax import lax
from jax.experimental import pallas as pl
from jax.experimental.pallas import tpu as pltpu


def _topk_sample_kernel(x_ref, g_ref, wp_ref, idx_ref, *, topk, unk_col):
    b = pl.program_id(1)                              # batch index (inner grid axis)
    x = x_ref[0].astype(jnp.float32)                  # [tT, V]; upcast AFTER the DMA
    tT, V = x.shape
    neg_inf = jnp.float32(-jnp.inf)

    # ---- k-th largest value per row (torch.topk(...)[0][..., -1] threshold) --------
    # Duplicate-aware walk over distinct values; x is kept immutable (no mutated copy).
    row_max = jnp.max(x, axis=-1, keepdims=True)      # reused for softmax stability
    m = row_max
    thresh = m
    done = jnp.sum((x >= m).astype(jnp.int32), axis=-1, keepdims=True) >= topk
    for _ in range(topk - 1):                         # topk is small & static -> unrolled
        m = jnp.max(jnp.where(x >= m, neg_inf, x), axis=-1, keepdims=True)
        hit = jnp.sum((x >= m).astype(jnp.int32), axis=-1, keepdims=True) >= topk
        newly = jnp.logical_and(jnp.logical_not(done), hit)
        thresh = jnp.where(newly, m, thresh)
        done = jnp.logical_or(done, newly)

    # ---- mask below threshold, softmax along vocab ----------------------------------
    masked = jnp.where(x < thresh, neg_inf, x)
    e = jnp.exp(masked - row_max)
    inv = 1.0 / jnp.sum(e, axis=-1, keepdims=True)    # [tT, 1] scalar-per-row divide
    p = e * inv

    wp_ref[0] = p.astype(wp_ref.dtype)
    # Zero the unk column with a direct one-lane store (no full [tT, V] iota + where).
    wp_ref[0, :, unk_col:unk_col + 1] = jnp.zeros((tT, 1), wp_ref.dtype)

    # ---- multinomial(word_prob[0], 1) via Gumbel-max over the *masked logits* -------
    # forward() only samples from batch 0, so skip all sampling work for b > 0.
    @pl.when(b == 0)
    def _():
        col = lax.broadcasted_iota(jnp.int32, (tT, V), 1)
        score = masked + g_ref[...]                    # argmax == multinomial(p) sample
        score = jnp.where(col == unk_col, neg_inf, score)
        smax = jnp.max(score, axis=-1, keepdims=True)
        # NOTE: if a row's entire top-k support is the unk column, score is all -inf
        # and the tie-break returns index 0 (torch.multinomial would raise instead).
        idx = jnp.min(jnp.where(score == smax, col, V), axis=-1, keepdims=True)
        idx_ref[0] = idx.astype(jnp.int32)

    @pl.when(b != 0)
    def _():
        idx_ref[0] = jnp.zeros((tT, 1), jnp.int32)     # unused; keep the block defined


def _pick_time_tile(T, V):
    # Target ~2 MiB per [tT, V] f32 working tile so double-buffered in/out tiles plus a
    # handful of live temporaries stay well under v7x's 64 MiB VMEM (and v5e's scoped
    # default), while still amortizing the ~0.35 us/step grid overhead.
    target = max(8, (2 * 1024 * 1024) // max(1, 4 * V))
    if T <= target:
        return T
    tT = (min(target, T) // 8) * 8
    while tT >= 8 and T % tT:
        tT -= 8
    return tT if tT >= 8 else T


def topk_sample_feedback(decoder_out, rng_key, *, topk=1, unk_id=-1):
    """Matches TopkSampleFeedBack.forward():
         word_prob  : [B, T, V], same dtype as decoder_out
         sample_idx : [T, 1] int32  (= multinomial(word_prob[0], 1); torch uses int64)
    """
    B, T, V = decoder_out.shape
    k = min(int(topk), V)
    unk_col = unk_id % V
    tT = _pick_time_tile(T, V)
    grid = (T // tT, B)

    # Gumbel noise for the batch-0 sampler, generated host-side.
    # TODO(synk): on hardware-only deployments this could use pltpu.prng_random_bits
    # in-kernel instead, saving the extra [T, V] HBM read (the interpret runner cannot
    # lower pltpu.prng_seed, which is why it lives outside the kernel here).
    gumbel = jax.random.gumbel(rng_key, (T, V), dtype=jnp.float32)

    kernel = functools.partial(_topk_sample_kernel, topk=k, unk_col=unk_col)

    wp, idx = pl.pallas_call(
        kernel,
        out_shape=(
            jax.ShapeDtypeStruct((B, T, V), decoder_out.dtype),
            jax.ShapeDtypeStruct((B, T, 1), jnp.int32),
        ),
        grid_spec=pltpu.PrefetchScalarGridSpec(
            num_scalar_prefetch=0,
            grid=grid,
            in_specs=[
                pl.BlockSpec((1, tT, V), lambda t, b: (b, t, 0)),   # logits, native dtype
                pl.BlockSpec((tT, V), lambda t, b: (t, 0)),         # gumbel noise (batch 0)
            ],
            out_specs=[
                pl.BlockSpec((1, tT, V), lambda t, b: (b, t, 0)),   # word_prob
                pl.BlockSpec((1, tT, 1), lambda t, b: (b, t, 0)),   # sample idx
            ],
        ),
        compiler_params=pltpu.CompilerParams(
            dimension_semantics=("parallel", "parallel"),
            vmem_limit_bytes=64 * 1024 * 1024,
        ),
    )(decoder_out, gumbel)

    # forward() samples only from batch 0; result shape [T, 1]
    return wp, idx[0]


if __name__ == "__main__":
    B, T, V = 2, 8, 128
    topk = 4
    unk_id = -1

    key = jax.random.PRNGKey(0)
    k_x, k_s = jax.random.split(key)
    decoder_out = jax.random.normal(k_x, (B, T, V), dtype=jnp.float32)

    wp, sample_idx = topk_sample_feedback(decoder_out, k_s, topk=topk, unk_id=unk_id)
    jax.block_until_ready((wp, sample_idx))

    # --- reference check for prepare() semantics (pure JAX) ---
    thr = jax.lax.top_k(decoder_out, topk)[0][..., -1:]
    masked = jnp.where(decoder_out < thr, -jnp.inf, decoder_out)
    p_ref = jax.nn.softmax(masked, axis=-1)
    p_ref = p_ref.at[..., unk_id % V].set(0.0)
    assert jnp.allclose(wp, p_ref, atol=1e-5), "word_prob mismatch vs reference"

    # sampled indices must come from the support of the batch-0 distribution
    chosen = jnp.take_along_axis(p_ref[0], sample_idx, axis=-1)
    assert bool(jnp.all(chosen > 0.0)), "sampled index has zero probability"
    assert sample_idx.shape == (T, 1)

    print("KERNEL_OK")
</pallas_src>

<mosaic_0001>
module attributes {stable_mosaic.version = 11 : i64} {
  func.func @_topk_sample_kernel(%arg0: i32, %arg1: i32, %arg2: memref<1x8x128xf32, #tpu.memory_space<vmem>>, %arg3: memref<8x128xf32, #tpu.memory_space<vmem>>, %arg4: memref<1x8x128xf32, #tpu.memory_space<vmem>>, %arg5: memref<1x8x1xi32, #tpu.memory_space<vmem>>) attributes {dimension_semantics = [#tpu.dimension_semantics<parallel>, #tpu.dimension_semantics<parallel>], iteration_bounds = array<i64: 1, 2>, scalar_prefetch = 0 : i64, scratch_operands = 0 : i64, tpu.core_type = #tpu.core_type<tc>, window_params = [{transform_indices = @transform_0, window_bounds = array<i64: 1, 8, 128>}, {transform_indices = @transform_1, window_bounds = array<i64: 8, 128>}, {transform_indices = @transform_2, window_bounds = array<i64: 1, 8, 128>}, {transform_indices = @transform_3, window_bounds = array<i64: 1, 8, 1>}]} {
    %c0 = arith.constant 0 : index
    %c0_0 = arith.constant 0 : index
    %c0_1 = arith.constant 0 : index
    %0 = vector.load %arg2[%c0, %c0_0, %c0_1] : memref<1x8x128xf32, #tpu.memory_space<vmem>>, vector<1x8x128xf32>
    %1 = vector.shape_cast %0 : vector<1x8x128xf32> to vector<8x128xf32>
    %cst = arith.constant dense<0xFF800000> : vector<8xf32>
    %2 = vector.multi_reduction <maximumf>, %1, %cst [1] : vector<8x128xf32> to vector<8xf32>
    %3 = vector.shape_cast %2 : vector<8xf32> to vector<8x1xf32>
    %4 = vector.broadcast %3 : vector<8x1xf32> to vector<8x128xf32>
    %5 = arith.cmpf oge, %1, %4 : vector<8x128xf32>
    %6 = arith.extui %5 : vector<8x128xi1> to vector<8x128xi32>
    %cst_2 = arith.constant dense<0> : vector<8xi32>
    %7 = vector.multi_reduction <add>, %6, %cst_2 [1] : vector<8x128xi32> to vector<8xi32>
    %8 = vector.shape_cast %7 : vector<8xi32> to vector<8x1xi32>
    %c4_i32 = arith.constant 4 : i32
    %9 = vector.broadcast %c4_i32 : i32 to vector<8x1xi32>
    %10 = arith.cmpi sge, %8, %9 : vector<8x1xi32>
    %11 = vector.broadcast %3 : vector<8x1xf32> to vector<8x128xf32>
    %12 = arith.cmpf oge, %1, %11 : vector<8x128xf32>
    %cst_3 = arith.constant 0xFF800000 : f32
    %13 = vector.broadcast %cst_3 : f32 to vector<8x128xf32>
    %14 = arith.select %12, %13, %1 : vector<8x128xi1>, vector<8x128xf32>
    %cst_4 = arith.constant dense<0xFF800000> : vector<8xf32>
    %15 = vector.multi_reduction <maximumf>, %14, %cst_4 [1] : vector<8x128xf32> to vector<8xf32>
    %16 = vector.shape_cast %15 : vector<8xf32> to vector<8x1xf32>
    %17 = vector.broadcast %16 : vector<8x1xf32> to vector<8x128xf32>
    %18 = arith.cmpf oge, %1, %17 : vector<8x128xf32>
    %19 = arith.extui %18 : vector<8x128xi1> to vector<8x128xi32>
    %cst_5 = arith.constant dense<0> : vector<8xi32>
    %20 = vector.multi_reduction <add>, %19, %cst_5 [1] : vector<8x128xi32> to vector<8xi32>
    %21 = vector.shape_cast %20 : vector<8xi32> to vector<8x1xi32>
    %c4_i32_6 = arith.constant 4 : i32
    %22 = vector.broadcast %c4_i32_6 : i32 to vector<8x1xi32>
    %23 = arith.cmpi sge, %21, %22 : vector<8x1xi32>
    %cst_7 = arith.constant dense<true> : vector<8x1xi1>
    %24 = arith.xori %10, %cst_7 : vector<8x1xi1>
    %25 = arith.andi %24, %23 : vector<8x1xi1>
    %26 = arith.select %25, %16, %3 : vector<8x1xi1>, vector<8x1xf32>
    %27 = arith.ori %10, %25 : vector<8x1xi1>
    %28 = vector.broadcast %16 : vector<8x1xf32> to vector<8x128xf32>
    %29 = arith.cmpf oge, %1, %28 : vector<8x128xf32>
    %cst_8 = arith.constant 0xFF800000 : f32
    %30 = vector.broadcast %cst_8 : f32 to vector<8x128xf32>
    %31 = arith.select %29, %30, %1 : vector<8x128xi1>, vector<8x128xf32>
    %cst_9 = arith.constant dense<0xFF800000> : vector<8xf32>
    %32 = vector.multi_reduction <maximumf>, %31, %cst_9 [1] : vector<8x128xf32> to vector<8xf32>
    %33 = vector.shape_cast %32 : vector<8xf32> to vector<8x1xf32>
    %34 = vector.broadcast %33 : vector<8x1xf32> to vector<8x128xf32>
    %35 = arith.cmpf oge, %1, %34 : vector<8x128xf32>
    %36 = arith.extui %35 : vector<8x128xi1> to vector<8x128xi32>
    %cst_10 = arith.constant dense<0> : vector<8xi32>
    %37 = vector.multi_reduction <add>, %36, %cst_10 [1] : vector<8x128xi32> to vector<8xi32>
    %38 = vector.shape_cast %37 : vector<8xi32> to vector<8x1xi32>
    %c4_i32_11 = arith.constant 4 : i32
    %39 = vector.broadcast %c4_i32_11 : i32 to vector<8x1xi32>
    %40 = arith.cmpi sge, %38, %39 : vector<8x1xi32>
    %cst_12 = arith.constant dense<true> : vector<8x1xi1>
    %41 = arith.xori %27, %cst_12 : vector<8x1xi1>
    %42 = arith.andi %41, %40 : vector<8x1xi1>
    %43 = arith.select %42, %33, %26 : vector<8x1xi1>, vector<8x1xf32>
    %44 = arith.ori %27, %42 : vector<8x1xi1>
    %45 = vector.broadcast %33 : vector<8x1xf32> to vector<8x128xf32>
    %46 = arith.cmpf oge, %1, %45 : vector<8x128xf32>
    %cst_13 = arith.constant 0xFF800000 : f32
    %47 = vector.broadcast %cst_13 : f32 to vector<8x128xf32>
    %48 = arith.select %46, %47, %1 : vector<8x128xi1>, vector<8x128xf32>
    %cst_14 = arith.constant dense<0xFF800000> : vector<8xf32>
    %49 = vector.multi_reduction <maximumf>, %48, %cst_14 [1] : vector<8x128xf32> to vector<8xf32>
    %50 = vector.shape_cast %49 : vector<8xf32> to vector<8x1xf32>
    %51 = vector.broadcast %50 : vector<8x1xf32> to vector<8x128xf32>
    %52 = arith.cmpf oge, %1, %51 : vector<8x128xf32>
    %53 = arith.extui %52 : vector<8x128xi1> to vector<8x128xi32>
    %cst_15 = arith.constant dense<0> : vector<8xi32>
    %54 = vector.multi_reduction <add>, %53, %cst_15 [1] : vector<8x128xi32> to vector<8xi32>
    %55 = vector.shape_cast %54 : vector<8xi32> to vector<8x1xi32>
    %c4_i32_16 = arith.constant 4 : i32
    %56 = vector.broadcast %c4_i32_16 : i32 to vector<8x1xi32>
    %57 = arith.cmpi sge, %55, %56 : vector<8x1xi32>
    %cst_17 = arith.constant dense<true> : vector<8x1xi1>
    %58 = arith.xori %44, %cst_17 : vector<8x1xi1>
    %59 = arith.andi %58, %57 : vector<8x1xi1>
    %60 = arith.select %59, %50, %43 : vector<8x1xi1>, vector<8x1xf32>
    %61 = vector.broadcast %60 : vector<8x1xf32> to vector<8x128xf32>
    %62 = arith.cmpf olt, %1, %61 : vector<8x128xf32>
    %cst_18 = arith.constant 0xFF800000 : f32
    %63 = vector.broadcast %cst_18 : f32 to vector<8x128xf32>
    %64 = arith.select %62, %63, %1 : vector<8x128xi1>, vector<8x128xf32>
    %65 = vector.broadcast %3 : vector<8x1xf32> to vector<8x128xf32>
    %66 = arith.subf %64, %65 : vector<8x128xf32>
    %67 = math.exp %66 : vector<8x128xf32>
    %cst_19 = arith.constant dense<0.000000e+00> : vector<8xf32>
    %68 = vector.multi_reduction <add>, %67, %cst_19 [1] : vector<8x128xf32> to vector<8xf32>
    %69 = vector.shape_cast %68 : vector<8xf32> to vector<8x1xf32>
    %cst_20 = arith.constant 1.000000e+00 : f32
    %70 = vector.broadcast %cst_20 : f32 to vector<8x1xf32>
    %71 = arith.divf %70, %69 : vector<8x1xf32>
    %72 = vector.broadcast %71 : vector<8x1xf32> to vector<8x128xf32>
    %73 = arith.mulf %67, %72 : vector<8x128xf32>
    %c0_21 = arith.constant 0 : index
    %c0_22 = arith.constant 0 : index
    %c0_23 = arith.constant 0 : index
    %74 = vector.load %arg4[%c0_21, %c0_22, %c0_23] : memref<1x8x128xf32, #tpu.memory_space<vmem>>, vector<1x8x128xf32>
    %75 = vector.shape_cast %74 : vector<1x8x128xf32> to vector<8x128xf32>
    %76 = vector.shape_cast %73 : vector<8x128xf32> to vector<1x8x128xf32>
    tpu.vector_store %arg4[%c0_21, %c0_22, %c0_23], %76 {strides = array<i32>} : memref<1x8x128xf32, #tpu.memory_space<vmem>>, vector<1x8x128xf32>,
    %cst_24 = arith.constant 0.000000e+00 : f32
    %77 = vector.broadcast %cst_24 : f32 to vector<8x1xf32>
    %c0_25 = arith.constant 0 : index
    %c0_26 = arith.constant 0 : index
    %c127 = arith.constant 127 : index
    %78 = vector.load %arg4[%c0_25, %c0_26, %c127] : memref<1x8x128xf32, #tpu.memory_space<vmem>>, vector<1x8x1xf32>
    %79 = vector.shape_cast %78 : vector<1x8x1xf32> to vector<8x1xf32>
    %80 = vector.shape_cast %77 : vector<8x1xf32> to vector<1x8x1xf32>
    tpu.vector_store %arg4[%c0_25, %c0_26, %c127], %80 {strides = array<i32>} : memref<1x8x128xf32, #tpu.memory_space<vmem>>, vector<1x8x1xf32>,
    %c0_i32 = arith.constant 0 : i32
    %81 = arith.cmpi eq, %arg1, %c0_i32 : i32
    %82 = arith.extui %81 : i1 to i32
    %cst_27 = arith.constant 0xFF800000 : f32
    %c0_i32_28 = arith.constant 0 : i32
    %83 = arith.cmpi ne, %82, %c0_i32_28 : i32
    scf.if %83 {
      %87 = tpu.iota {dimensions = array<i32: 1>} : vector<8x128xi32>
      %c0_31 = arith.constant 0 : index
      %c0_32 = arith.constant 0 : index
      %88 = vector.load %arg3[%c0_31, %c0_32] : memref<8x128xf32, #tpu.memory_space<vmem>>, vector<8x128xf32>
      %89 = arith.addf %64, %88 : vector<8x128xf32>
      %c127_i32 = arith.constant 127 : i32
      %90 = vector.broadcast %c127_i32 : i32 to vector<8x128xi32>
      %91 = arith.cmpi eq, %87, %90 : vector<8x128xi32>
      %92 = vector.broadcast %cst_27 : f32 to vector<8x128xf32>
      %93 = arith.select %91, %92, %89 : vector<8x128xi1>, vector<8x128xf32>
      %cst_33 = arith.constant dense<0xFF800000> : vector<8xf32>
      %94 = vector.multi_reduction <maximumf>, %93, %cst_33 [1] : vector<8x128xf32> to vector<8xf32>
      %95 = vector.shape_cast %94 : vector<8xf32> to vector<8x1xf32>
      %96 = vector.broadcast %95 : vector<8x1xf32> to vector<8x128xf32>
      %97 = arith.cmpf oeq, %93, %96 : vector<8x128xf32>
      %c128_i32 = arith.constant 128 : i32
      %98 = vector.broadcast %c128_i32 : i32 to vector<8x128xi32>
      %99 = arith.select %97, %87, %98 : vector<8x128xi1>, vector<8x128xi32>
      %cst_34 = arith.constant dense<2147483647> : vector<8xi32>
      %100 = vector.multi_reduction <minsi>, %99, %cst_34 [1] : vector<8x128xi32> to vector<8xi32>
      %101 = vector.shape_cast %100 : vector<8xi32> to vector<8x1xi32>
      %c0_35 = arith.constant 0 : index
      %c0_36 = arith.constant 0 : index
      %c0_37 = arith.constant 0 : index
      %102 = vector.load %arg5[%c0_35, %c0_36, %c0_37] : memref<1x8x1xi32, #tpu.memory_space<vmem>>, vector<1x8x1xi32>
      %103 = vector.shape_cast %102 : vector<1x8x1xi32> to vector<8x1xi32>
      %104 = vector.shape_cast %101 : vector<8x1xi32> to vector<1x8x1xi32>
      tpu.vector_store %arg5[%c0_35, %c0_36, %c0_37], %104 {strides = array<i32>} : memref<1x8x1xi32, #tpu.memory_space<vmem>>, vector<1x8x1xi32>,
    } else {
    }
    %c0_i32_29 = arith.constant 0 : i32
    %84 = arith.cmpi ne, %arg1, %c0_i32_29 : i32
    %85 = arith.extui %84 : i1 to i32
    %c0_i32_30 = arith.constant 0 : i32
    %86 = arith.cmpi ne, %85, %c0_i32_30 : i32
    scf.if %86 {
      %c0_i32_31 = arith.constant 0 : i32
      %87 = vector.broadcast %c0_i32_31 : i32 to vector<8x1xi32>
      %c0_32 = arith.constant 0 : index
      %c0_33 = arith.constant 0 : index
      %c0_34 = arith.constant 0 : index
      %88 = vector.load %arg5[%c0_32, %c0_33, %c0_34] : memref<1x8x1xi32, #tpu.memory_space<vmem>>, vector<1x8x1xi32>
      %89 = vector.shape_cast %88 : vector<1x8x1xi32> to vector<8x1xi32>
      %90 = vector.shape_cast %87 : vector<8x1xi32> to vector<1x8x1xi32>
      tpu.vector_store %arg5[%c0_32, %c0_33, %c0_34], %90 {strides = array<i32>} : memref<1x8x1xi32, #tpu.memory_space<vmem>>, vector<1x8x1xi32>,
    } else {
    }
    return
  }
  func.func @transform_0(%arg0: i32, %arg1: i32) -> (i32, i32, i32) {
    %c0_i32 = arith.constant 0 : i32
    %c0_i32_0 = arith.constant 0 : i32
    return %arg1, %arg0, %c0_i32 : i32, i32, i32
  }
  func.func @transform_1(%arg0: i32, %arg1: i32) -> (i32, i32) {
    %c0_i32 = arith.constant 0 : i32
    %c0_i32_0 = arith.constant 0 : i32
    return %arg0, %c0_i32 : i32, i32
  }
  func.func @transform_2(%arg0: i32, %arg1: i32) -> (i32, i32, i32) {
    %c0_i32 = arith.constant 0 : i32
    %c0_i32_0 = arith.constant 0 : i32
    return %arg1, %arg0, %c0_i32 : i32, i32, i32
  }
  func.func @transform_3(%arg0: i32, %arg1: i32) -> (i32, i32, i32) {
    %c0_i32 = arith.constant 0 : i32
    %c0_i32_0 = arith.constant 0 : i32
    return %arg1, %arg0, %c0_i32 : i32, i32, i32
  }
}

</mosaic_0001>

<bundles_post_ra>
// kernel: tpu_custom_call.1
= control target key start
LH: loop header
LB: loop body
LE: loop exit
PB: predicated region body
PF: predicated region fallthrough
CT: control target
= control target key end

     0   :  { %9 = vsyncpa [#allocation3], 0  ;;  %s1022_s0 = inlined_call_operand.hbm [shape: f32[2,8,128], index: 0, kind: input, shape index: {}]   ;;  %s1023_s1 = inlined_call_operand.hbm [shape: f32[8,128], index: 1, kind: input, shape index: {}]   ;;  %s1024_s2 = inlined_call_operand.hbm [shape: f32[2,8,128], index: 2, kind: output, shape index: {0}]   ;;  %s1025_s3 = inlined_call_operand.vmem [shape: s32[2,8,1], index: 3, kind: output, shape index: {1}]  }
   0x1   :  { %11 = vsyncpa [#allocation3 + $0x1], 0 }
   0x2   :  { %12 = vsyncpa [#allocation6], 0 }
   0x3   :  { %13 = vsyncpa [#allocation4], 0 }
   0x4   :  { %15 = vsyncpa [#allocation4 + $0x1], 0  ;;  %s813_s12 = smov 0   ;;  %s815_s13 = smov 0  }
   0x5   :  { %s817_s14 = smov 0   ;;  %s819_s15 = smov 0  }
   0x6   :  { %s821_s16 = smov 0   ;;  %s823_s17 = smov 0  }
   0x7 LB: > { %s541_s18 = sadd.s32 4294967295, %s786_s17   ;;  %s542_s19 = sadd.s32 4294967294, %s786_s17   ;;  %s786_s17 = sphi %s823_s17, %s21_s17   ;;  %s782_s16 = sphi %s821_s16, %s1041_s16   ;;  %s778_s15 = sphi %s819_s15, %s1040_s15   ;;  %s774_s14 = sphi %s817_s14, %s1039_s14   ;;  %s770_s13 = sphi %s815_s13, %s1038_s13   ;;  %s766_s12 = sphi %s813_s12, %s1037_s12  }
   0x8   : > { %p55_p0 = scmp.ne.s32.totalorder %s770_s13, %s766_s12  ;;  %p847_p1 = scmp.eq.s32.totalorder %s541_s18, 0 }
   0x9   : > { %p851_p2 = scmp.eq.s32.totalorder %s541_s18, 1  ;;  %p113_p3 = scmp.eq.s32.totalorder %s542_s19, 1 }
   0xa   : > { %p857_p4 = por %p847_p1, %p55_p0  ;;  %p543_p5 = scmp.ge.s32.totalorder %s786_s17, 1 }
   0xb   : > { %p862_p6 = por %p113_p3, %p55_p0  ;;  %p148_p7 = scmp.lt.s32.totalorder %s786_s17, 3 }
   0xc   : > { %s162_s26 = sshll.u32 %s1023_s1, 4  ;;  %p545_p9 = scmp.ge.s32.totalorder %s786_s17, 2  ;;  %s163_s26 = int_to_ptr.hbm [resolvable:$true] %s162_s26 }
   0xd   : > { %p870_p8 = pnand %p543_p5, %p148_p7  ;;  %s788_s28 = smov [#allocation5]  }
   0xe   : > { %s164_s29 = sshll.u32 %s788_s28, 4  ;;  %s30_s30 = sadd.s32 1, %s782_s16  ;;  %s165_s29 = int_to_ptr.vmem [resolvable:$true] %s164_s29 }
   0xf   : > { %p567_p10 = pneg %p870_p8  ;;  %p31_p12 = scmp.ge.s32.totalorder %s30_s30, 2 }
  0x10   : > { %s42_s4 = sadd.s32 1, %s774_s14  ;;  %p49_p13 = scmp.ne.s32.totalorder %s774_s14, %s770_s13 }
  0x11   : > { %p568_p11 = pnand %p567_p10, %p847_p1  ;;  %p50_p0 = scmp.eq.s32.totalorder %s786_s17, 0 }
  0x12   : > { %s1043_s30 = smov (%p31_p12, %s30_s30), 0  ;;  %p892_p5 = por %p851_p2, %p49_p13 }
  0x13   : > { %570 = dma.hbm_to_vmem [thread:$0]  (!%p568_p11), %s163_s26, 128, %s165_s29, [#allocation6]  }
  0x14   : > { %p886_p3 = por %p50_p0, %p49_p13  ;;  %s37_s7 = ssub.s32 %s782_s16, %s1043_s30 }
  0x15   : > { %p580_p7 = scmp.lt.s32.totalorder %s786_s17, 2  ;;  %p40_p10 = scmp.eq.s32.totalorder %s37_s7, 0 }
  0x16   : > { %s175_s8 = sand.u32 1, %s774_s14   ;;  %s547_s11 = sshll.u32 %s782_s16, 3 }
  0x17   : > { %s546_s9 = sshll.u32 %s175_s8, 3  ;;  %s184_s24 = scalar_lea.hbm %s1022_s0, %s547_s11 }
  0x18   : > { %s901_s10 = scalar_select %p40_p10, %s774_s14, %s42_s4  }
  0x19   : > { %s179_s25 = scalar_lea.vmem [#allocation2], %s546_s9  ;;  %s186_s21 = sshll.u32 %s184_s24, 4  ;;  %s187_s21 = int_to_ptr.hbm [resolvable:$true] %s186_s21 }
  0x1a   : > { %s188_s26 = sshll.u32 %s179_s25, 4  ;;  %p572_p2 = pnand %p580_p7, %p886_p3  ;;  %s189_s26 = int_to_ptr.vmem [resolvable:$true] %s188_s26 }
  0x1b   : > { %s176_s28 = scalar_lea.sflag [#allocation3], %s175_s8  ;;  %197 = sbr.rel (%p870_p8) target bundleno = 1178 (0x49a), region = 28 }
  0x1c   : > { %574 = dma.hbm_to_vmem [thread:$0]  (!%p572_p2), %s187_s21, 128, %s189_s26, %s176_s28  }
  0x1d   : > { %s912_s29 = sand.u32 (!%p870_p8), 1, %s770_s13  }
  0x1e   : > { %s549_s4 = sshll.u32 (!%p870_p8), %s912_s29, 3  ;;  %s200_s7 = scalar_lea.sflag (!%p870_p8), [#allocation3], %s912_s29 }
  0x1f   : > { %s203_s9 = scalar_lea.vmem (!%p870_p8), [#allocation2], %s549_s4 }
  0x20   : > { %753 = dma.done.wait (%p857_p4), %s200_s7, 128  }
  0x21   : > { %755 = vsyncadd (%p857_p4), %s200_s7, 4294967168 }
  0x22   : > { %757 = dma.done.wait (%p847_p1), [#allocation6], 128  }
  0x23   : > { %759 = vsyncadd (%p847_p1), [#allocation6], 4294967168  ;;  %v926_v0 = vld [vmem:[%s203_s9] sm:$0xff]  ;;  %v789_v3 = vmov 0   ;;  %vm790_vm6 = vmmov 1   ;;  %p239_p1 = scmp.lt.s32.totalorder %s778_s15, 1 }
  0x24   : > { %247 = vmax.xlane.f32.xlu0 %v926_v0  ;;  %s975_s11 = scalar_lea.vmem [#allocation7], %s549_s4  ;;  %p553_p4 = scmp.ne.s32.totalorder %s778_s15, 0 }
  0x25   : > { %s240_s20 = scalar_select %p239_p1, %s778_s15, 1 }
  0x27   : > { %s552_s22 = sshll.u32 %s240_s20, 3 }
  0x28   : > { %s971_s8 = scalar_lea.vmem %s1025_s3, %s552_s22 }
  0x97   : > { %v929_v1 = vpop.xlane.xlu0 %247 }
  0x98   : > { %vm249_vm0 = vcmp.ge.f32.partialorder %v926_v0, %v929_v1 }
  0x99   : > { %v264_v2 = vsel %vm249_vm0, -inf, %v926_v0  ;;  %v250_v4 = vsel %vm249_vm0, 1, %v789_v3 }
  0x9a   : > { %265 = vmax.xlane.f32.xlu0 %v264_v2  ;;  %v252_v5 = vshrl.u32 %v250_v4, 16  ;;  %v251_v7 = vand.u32 65535, %v250_v4 }
  0x9c   : > { %v254_v6 = vcvt.s32.f32 %v252_v5  ;;  %v253_v8 = vcvt.s32.f32 %v251_v7 }
  0x9e   : > { %257 = vadd.xlane.f32.xlu2 %v254_v6 }
  0xa2   : > { %255 = vadd.xlane.f32.xlu0 %v253_v8 }
 0x10d   : > { %v934_v9 = vpop.xlane.xlu0 %265 }
 0x10e   : > { %vm267_vm1 = vcmp.ge.f32.partialorder %v926_v0, %v934_v9 }
 0x10f   : > { %v286_v10 = vsel %vm267_vm1, -inf, %v926_v0  ;;  %v268_v11 = vsel %vm267_vm1, 1, %v789_v3 }
 0x110   : > { %287 = vmax.xlane.f32.xlu1 %v286_v10  ;;  %v270_v12 = vshrl.u32 %v268_v11, 16  ;;  %v269_v21 = vand.u32 65535, %v268_v11  ;;  %v791_v10 = vmov 0.0  }
 0x111   : > { %v258_v29 = vpop.xlane.xlu2 %257 }
 0x112   : > { %v272_v13 = vcvt.s32.f32 %v270_v12  ;;  %v271_v22 = vcvt.s32.f32 %v269_v21  ;;  %v260_v32 = vcvt.f32.s32 %v258_v29 }
 0x114   : > { %275 = vadd.xlane.f32.xlu2 %v272_v13  ;;  %v261_v37 = vshll.u32 %v260_v32, 16 }
 0x115   : > { %v256_v31 = vpop.xlane.xlu0 %255 }
 0x116   : > { %v259_v35 = vcvt.f32.s32 %v256_v31 }
 0x118   : > { %v262_v39 = vadd.s32 %v261_v37, %v259_v35 }
 0x11a   : > { %vm263_vm4 = vcmp.ge.s32.totalorder %v262_v39, 4 }
 0x11b   : > { %vm282_vm7 = vmxor %vm263_vm4, %vm790_vm6 }
 0x183   : > { %v288_v14 = vpop.xlane.xlu1 %287 }
 0x184   : > { %vm289_vm2 = vcmp.ge.f32.partialorder %v926_v0, %v288_v14 }
 0x185   : > { %v308_v15 = vsel %vm289_vm2, -inf, %v926_v0  ;;  %v290_v16 = vsel %vm289_vm2, 1, %v789_v3 }
 0x186   : > { %309 = vmax.xlane.f32.xlu1 %v308_v15  ;;  %v292_v17 = vshrl.u32 %v290_v16, 16  ;;  %v291_v18 = vand.u32 65535, %v290_v16 }
 0x187   : > { %v276_v30 = vpop.xlane.xlu2 %275 }
 0x188   : > { %v294_v19 = vcvt.s32.f32 %v292_v17  ;;  %v293_v20 = vcvt.s32.f32 %v291_v18  ;;  %v278_v34 = vcvt.f32.s32 %v276_v30 }
 0x18a   : > { %297 = vadd.xlane.f32.xlu2 %v294_v19  ;;  %295 = vadd.xlane.f32.xlu0 %v293_v20  ;;  %v279_v38 = vshll.u32 %v278_v34, 16 }
 0x18e   : > { %273 = vadd.xlane.f32.xlu1 %v271_v22 }
 0x1f9   : > { %v310_v23 = vpop.xlane.xlu1 %309 }
 0x1fa   : > { %vm311_vm3 = vcmp.ge.f32.partialorder %v926_v0, %v310_v23 }
 0x1fb   : > { %v312_v24 = vsel %vm311_vm3, 1, %v789_v3 }
 0x1fc   : > { %v314_v25 = vshrl.u32 %v312_v24, 16  ;;  %v313_v26 = vand.u32 65535, %v312_v24 }
 0x1fd   : > { %v298_v40 = vpop.xlane.xlu2 %297  ;;  %v296_v43 = vpop.xlane.xlu0 %295 }
 0x1fe   : > { %v316_v27 = vcvt.s32.f32 %v314_v25  ;;  %v315_v28 = vcvt.s32.f32 %v313_v26  ;;  %v300_v42 = vcvt.f32.s32 %v298_v40  ;;  %v299_v46 = vcvt.f32.s32 %v296_v43 }
 0x200   : > { %319 = vadd.xlane.f32.xlu1 %v316_v27  ;;  %317 = vadd.xlane.f32.xlu2 %v315_v28  ;;  %v301_v44 = vshll.u32 %v300_v42, 16 }
 0x201   : > { %v274_v33 = vpop.xlane.xlu1 %273 }
 0x202   : > { %v277_v36 = vcvt.f32.s32 %v274_v33  ;;  %v302_v48 = vadd.s32 %v301_v44, %v299_v46 }
 0x204   : > { %v280_v41 = vadd.s32 %v279_v38, %v277_v36  ;;  %vm303_vm11 = vcmp.ge.s32.totalorder %v302_v48, 4 }
 0x206   : > { %vm281_vm5 = vcmp.ge.s32.totalorder %v280_v41, 4 }
 0x207   : > { %vm943_vm8 = vmand %vm282_vm7, %vm281_vm5 }
 0x208   : > { %vm949_vm9 = vmor %vm263_vm4, %vm943_vm8  ;;  %v284_v55 = vsel %vm943_vm8, %v934_v9, %v929_v1 }
 0x209   : > { %vm304_vm10 = vmxor %vm949_vm9, %vm790_vm6 }
 0x20a   : > { %vm305_vm12 = vmand %vm304_vm10, %vm303_vm11 }
 0x20b   : > { %vm307_vm13 = vmor %vm949_vm9, %vm305_vm12  ;;  %v306_v56 = vsel %vm305_vm12, %v288_v14, %v284_v55 }
 0x20c   : > { %vm326_vm15 = vmxor %vm307_vm13, %vm790_vm6  ;;  %vm353_vm6 = vcmask 1048568  }
 0x273   : > { %v320_v49 = vpop.xlane.xlu1 %319  ;;  %v318_v50 = vpop.xlane.xlu2 %317 }
 0x274   : > { %v322_v51 = vcvt.f32.s32 %v320_v49  ;;  %v321_v53 = vcvt.f32.s32 %v318_v50 }
 0x276   : > { %v323_v52 = vshll.u32 %v322_v51, 16 }
 0x278   : > { %v324_v54 = vadd.s32 %v323_v52, %v321_v53 }
 0x27a   : > { %vm325_vm14 = vcmp.ge.s32.totalorder %v324_v54, 4 }
 0x27b   : > { %vm327_vm0 = vmand %vm326_vm15, %vm325_vm14 }
 0x27c   : > { %v328_v57 = vsel %vm327_vm0, %v310_v23, %v306_v56 }
 0x27d   : > { %vm329_vm1 = vcmp.lt.f32.partialorder %v926_v0, %v328_v57 }
 0x27e   : > { %v330_v58 = vsel %vm329_vm1, -inf, %v926_v0 }
 0x27f   : > { %v331_v59 = vsub.f32 %v330_v58, %v929_v1 }
 0x281   : > { %v332_v60 = vmul.f32 1.442695, %v331_v59 }
 0x283   : > { %636 = vpow2.f32 %v332_v60 }
 0x289   : > { %v637_v61 = vpop.eup %636 }
 0x28a   : > { %334 = vadd.xlane.f32.xlu0 %v637_v61 }
 0x2fd   : > { %v335_v62 = vpop.xlane.xlu0 %334 }
 0x2fe   : > { %638 = vrcp.f32 %v335_v62  ;;  %v347_v3 = vand.u32 2147483648, %v335_v62  ;;  %v345_v4 = vand.u32 2147483647, %v335_v62  ;;  %vm341_vm3 = vweird.f32 %v335_v62 }
 0x300   : > { %v348_v6 = vor.u32 1.1754944e-38, %v347_v3  ;;  %vm346_vm5 = vcmp.eq.f32.partialorder %v345_v4, 8.507059e+37 }
 0x304   : > { %v639_v63 = vpop.eup %638 }
 0x305   : > { %v337_v2 = vmul.f32 %v639_v63, %v335_v62  ;;  %vm342_vm2 = vweird.f32 %v639_v63 }
 0x306   : > { %vm343_vm4 = vmor %vm341_vm3, %vm342_vm2 }
 0x307   : > { %v338_v0 = vsub.f32 1.0, %v337_v2 }
 0x309   : > { %v339_v1 = vmul.f32 %v639_v63, %v338_v0 }
 0x30b   : > { %v340_v5 = vadd.f32 %v639_v63, %v339_v1 }
 0x30d   : > { %v344_v7 = vsel %vm343_vm4, %v639_v63, %v340_v5 }
 0x30e   : > { %v349_v8 = vsel %vm346_vm5, %v348_v6, %v344_v7  ;;  %358 = sbr.rel (%p553_p4) target bundleno = 1154 (0x482), region = 40 }
 0x30f   : > { %v351_v9 = vmul.f32 %v637_v61, %v349_v8 }
 0x311   : > { %352 = vst [vmem:[%s975_s11] sm:$0xff] %v351_v9 }
 0x312   : > { %354 = vst.msk [vmem:[%s975_s11] sm:$0xff] %vm353_vm6, %v791_v10 }
 0x313   : > { %v359_v11 = vlaneseq  ;;  %v361_v12 = vld [vmem:[#allocation5] sm:$0xff]  ;;  %vm383_vm10 = vcmask 7168  }
 0x314   : > { %v362_v13 = vadd.f32 %v361_v12, %v330_v58 }
 0x315   : > { %v360_v14 = vand.u32 127, %v359_v11 }
 0x317   : > { %vm363_vm7 = vcmp.eq.s32.totalorder %v360_v14, 127 }
 0x318   : > { %v364_v15 = vsel %vm363_vm7, -inf, %v362_v13 }
 0x319   : > { %365 = vmax.xlane.f32.xlu0 %v364_v15 }
 0x38c   : > { %v366_v16 = vpop.xlane.xlu0 %365 }
 0x38d   : > { %vm367_vm8 = vcmp.eq.f32.partialorder %v364_v15, %v366_v16 }
 0x38e   : > { %v368_v17 = vsel %vm367_vm8, %v360_v14, 128 }
 0x38f   : > { %v370_v18 = vshra.s32 %v368_v17, 16  ;;  %v369_v20 = vand.u32 65535, %v368_v17 }
 0x391   : > { %v372_v19 = vcvt.s32.f32 %v370_v18  ;;  %v371_v22 = vcvt.s32.f32 %v369_v20 }
 0x393   : > { %373 = vmin.xlane.f32.xlu0 %v372_v19 }
 0x406   : > { %v374_v21 = vpop.xlane.xlu0 %373 }
 0x407   : > { %vm375_vm9 = vcmp.eq.f32.partialorder %v372_v19, %v374_v21  ;;  %v380_v24 = vcvt.f32.s32 %v374_v21 }
 0x408   : > { %v376_v23 = vsel %vm375_vm9, %v371_v22, inf }
 0x409   : > { %377 = vmin.xlane.f32.xlu1 %v376_v23  ;;  %v381_v26 = vshll.u32 %v380_v24, 16 }
 0x47c   : > { %v378_v25 = vpop.xlane.xlu1 %377 }
 0x47d   : > { %v379_v27 = vcvt.f32.s32 %v378_v25 }
 0x47f   : > { %v382_v28 = vadd.s32 %v381_v26, %v379_v27 }
 0x481   : > { %384 = vst.msk [vmem:[%s971_s8] sm:$0xff] %vm383_vm10, %v382_v28 }
 0x482 PF: > { %p554_p8 = scmp.eq.s32.totalorder %s778_s15, 0 }
 0x484   : > { %388 = sbr.rel (%p554_p8) target bundleno = 1163 (0x48b), region = 44 }
 0x489   : > { %vm389_vm11 = vcmask 7168   ;;  %v792_v29 = vmov 0  }
 0x48a   : > { %390 = vst.msk [vmem:[%s971_s8] sm:$0xff] %vm389_vm11, %v792_v29 }
 0x48b PF: > { %s556_s18 = sshll.u32 %s778_s15, 3  ;;  %s412_s26 = sshll.u32 %s975_s11, 4  ;;  %s413_s26 = int_to_ptr.vmem [resolvable:$true] %s412_s26 }
 0x48c   : > { %s410_s25 = scalar_lea.hbm %s1024_s2, %s556_s18  ;;  %s392_s28 = scalar_lea.sflag [#allocation4], %s912_s29 }
 0x48d   : > { %s414_s21 = sshll.u32 %s410_s25, 4  ;;  %s720_s15 = scalar_lea.hbm %s1024_s2, 16  ;;  %s415_s21 = int_to_ptr.hbm [resolvable:$true] %s414_s21 }
 0x48e   : > { %s714_s4 = sshra.s32 %s415_s21, 4  ;;  %s715_s4 = int_to_ptr.hbm [resolvable:$true] %s714_s4 }
 0x48f   : > { %s716_s7 = scalar_lea.hbm %s715_s4, 8  ;;  %p721_p0 = scmp.lt.s32.totalorder %s715_s4, %s1024_s2 }
 0x490   : > { %p717_p11 = scmp.ne.s32.totalorder %s715_s4, %s716_s7  ;;  %p722_p3 = scmp.lt.s32.totalorder %s720_s15, %s716_s7 }
 0x492   : > { %p718_p12 = pnand %p717_p11, %p892_p5  ;;  %p723_p7 = por %p722_p3, %p721_p0 }
 0x494   : > { %p719_p13 = pneg %p718_p12 }
 0x496   : > { %p724_p10 = pnand %p723_p7, %p719_p13 }
 0x498   : > { %727 = shalt.err (!%p724_p10)
}
 0x499   : > { %565 = dma.vmem_to_hbm [thread:$0]  (%p892_p5), %s413_s26, 128, %s415_s21, %s392_s28  }
 0x49a PF: > { %s429_s29 = sand.u32 1, %s766_s12   ;;  %p576_p2 = pnand %p545_p9, %p862_p6 }
 0x49b   : > { %s430_s5 = scalar_lea.sflag [#allocation4], %s429_s29 }
 0x49c   : > { %p577_p1 = pneg %p576_p2 }
 0x49e   : > { %761 = dma.done.wait (%p577_p1), %s430_s5, 128  }
 0x49f   : > { %763 = vsyncadd (%p577_p1), %s430_s5, 4294967168  ;;  %s21_s17 = sadd.s32 1, %s786_s17   ;;  %s1037_s12 = smov %s770_s13 }
 0x4a0   : > { %p18_p4 = scmp.ge.s32.totalorder %s21_s17, 4   ;;  %s1038_s13 = smov %s774_s14 }
 0x4a1   : > { %s1039_s14 = smov %s901_s10  ;;  %s1040_s15 = smov %s782_s16 }
 0x4a2   : > { %s1041_s16 = smov %s1043_s30  ;;  %20 = sbr.rel (!%p18_p4) target bundleno = 7 (0x7), region = 98 }
 0x4a7   :  { %446 = vsyncpa [#allocation3], 1 }
 0x4a8   :  { %448 = vsyncpa [#allocation3 + $0x1], 1 }
 0x4a9   :  { %449 = vsyncpa [#allocation6], 1 }
 0x4aa   :  { %450 = vsyncpa [#allocation4], 1 }
 0x4ab   :  { %452 = vsyncpa [#allocation4 + $0x1], 1 }

</bundles_post_ra>
